<compile_context>
chip_gen: v7x
topology: tpu7x:2x2x1
jax: 0.10.0
libtpu: 0.0.40
codegen_flags: <defaults>
</compile_context>

<pallas_src>
import numpy as np

import jax
import jax.numpy as jnp
from jax.experimental import pallas as pl
from jax.experimental.pallas import tpu as pltpu


def _drop_path_kernel(scale_ref, x_ref, o_ref):
    # scale_ref: (TB, 1) float32, x_ref/o_ref: (TB, TC)
    o_ref[...] = (x_ref[...] * scale_ref[...]).astype(o_ref.dtype)


def drop_path_pallas(x, *, drop_prob=0.0, scale_by_keep=True, training=False,
                     key=None):
    """JAX/Pallas equivalent of DropPath.forward (per-sample stochastic depth)."""
    if drop_prob == 0.0 or not training:
        return x
    keep_prob = 1.0 - drop_prob

    B = x.shape[0]
    F = int(np.prod(x.shape[1:])) if x.ndim > 1 else 1

    if key is None:
        key = jax.random.PRNGKey(0)

    # Per-sample keep mask & scale, computed once in the wrapper (plain XLA).
    keep = jax.random.bernoulli(key, p=keep_prob, shape=(B,))
    scale_val = (1.0 / keep_prob) if (scale_by_keep and keep_prob > 0.0) else 1.0
    scale = jnp.where(keep, jnp.float32(scale_val), jnp.float32(0.0)).reshape(B, 1)

    x2 = x.reshape(B, F)

    # Tile sizes: lane-dense last dim (multiple of 128) when possible,
    # otherwise fall back to the full feature extent (always legal).
    if F % 128 == 0:
        TC = min(F, 8192)
    else:
        TC = F
    TB = B if B < 8 else 8

    grid = (pl.cdiv(B, TB), pl.cdiv(F, TC))

    out = pl.pallas_call(
        _drop_path_kernel,
        out_shape=jax.ShapeDtypeStruct((B, F), x.dtype),
        grid_spec=pl.GridSpec(
            grid=grid,
            in_specs=[
                pl.BlockSpec((TB, 1), lambda i, j: (i, 0)),    # per-sample scale
                pl.BlockSpec((TB, TC), lambda i, j: (i, j)),   # x tile
            ],
            out_specs=pl.BlockSpec((TB, TC), lambda i, j: (i, j)),
        ),
        compiler_params=pltpu.CompilerParams(
            dimension_semantics=("parallel", "parallel")),
    )(scale, x2)

    return out.reshape(x.shape)


if __name__ == "__main__":
    root = jax.random.PRNGKey(0)
    data_key, mask_key = jax.random.split(root)

    B, N, D = 2, 8, 32
    x = jax.random.normal(data_key, (B, N, D), dtype=jnp.float32)

    drop_prob = 0.25
    keep_prob = 1.0 - drop_prob

    out = drop_path_pallas(x, drop_prob=drop_prob, scale_by_keep=True,
                           training=True, key=mask_key)
    out = jax.block_until_ready(out)

    # Reference: recompute the same mask with the same key.
    keep_ref = jax.random.bernoulli(mask_key, p=keep_prob, shape=(B,))
    scale_ref = jnp.where(keep_ref, jnp.float32(1.0 / keep_prob),
                          jnp.float32(0.0)).reshape(B, 1, 1)
    ref = np.asarray(x * scale_ref)
    np.testing.assert_allclose(np.asarray(out), ref, rtol=1e-6, atol=1e-6)

    # Each sample is either zeroed or scaled by exactly 1/keep_prob.
    x_np, out_np = np.asarray(x), np.asarray(out)
    for b in range(B):
        if np.allclose(out_np[b], 0.0) and not bool(keep_ref[b]):
            continue
        np.testing.assert_allclose(out_np[b], x_np[b] / keep_prob,
                                   rtol=1e-5, atol=1e-5)

    # Eval / drop_prob=0 path is identity (no kernel launch).
    out_eval = jax.block_until_ready(
        drop_path_pallas(x, drop_prob=drop_prob, training=False))
    np.testing.assert_allclose(np.asarray(out_eval), x_np)

    out_zero = jax.block_until_ready(
        drop_path_pallas(x, drop_prob=0.0, training=True, key=mask_key))
    np.testing.assert_allclose(np.asarray(out_zero), x_np)

    print("KERNEL_OK")
</pallas_src>

<mosaic_0001>
module attributes {stable_mosaic.version = 11 : i64} {
  func.func @_drop_path_kernel(%arg0: i32, %arg1: i32, %arg2: memref<2x1xf32, #tpu.memory_space<vmem>>, %arg3: memref<2x256xf32, #tpu.memory_space<vmem>>, %arg4: memref<2x256xf32, #tpu.memory_space<vmem>>) attributes {dimension_semantics = [#tpu.dimension_semantics<parallel>, #tpu.dimension_semantics<parallel>], iteration_bounds = array<i64: 1, 1>, scalar_prefetch = 0 : i64, scratch_operands = 0 : i64, tpu.core_type = #tpu.core_type<tc>, window_params = [{transform_indices = @transform_0, window_bounds = array<i64: 2, 1>}, {transform_indices = @transform_1, window_bounds = array<i64: 2, 256>}, {transform_indices = @transform_2, window_bounds = array<i64: 2, 256>}]} {
    %c0 = arith.constant 0 : index
    %c0_0 = arith.constant 0 : index
    %0 = vector.load %arg3[%c0, %c0_0] : memref<2x256xf32, #tpu.memory_space<vmem>>, vector<2x256xf32>
    %c0_1 = arith.constant 0 : index
    %c0_2 = arith.constant 0 : index
    %1 = vector.load %arg2[%c0_1, %c0_2] : memref<2x1xf32, #tpu.memory_space<vmem>>, vector<2x1xf32>
    %2 = vector.broadcast %1 : vector<2x1xf32> to vector<2x256xf32>
    %3 = arith.mulf %0, %2 : vector<2x256xf32>
    %c0_3 = arith.constant 0 : index
    %c0_4 = arith.constant 0 : index
    %4 = vector.load %arg4[%c0_3, %c0_4] : memref<2x256xf32, #tpu.memory_space<vmem>>, vector<2x256xf32>
    tpu.vector_store %arg4[%c0_3, %c0_4], %3 {strides = array<i32>} : memref<2x256xf32, #tpu.memory_space<vmem>>, vector<2x256xf32>,
    return
  }
  func.func @transform_0(%arg0: i32, %arg1: i32) -> (i32, i32) {
    %c0_i32 = arith.constant 0 : i32
    %c0_i32_0 = arith.constant 0 : i32
    return %arg0, %c0_i32 : i32, i32
  }
  func.func @transform_1(%arg0: i32, %arg1: i32) -> (i32, i32) {
    %c0_i32 = arith.constant 0 : i32
    return %arg0, %arg1 : i32, i32
  }
  func.func @transform_2(%arg0: i32, %arg1: i32) -> (i32, i32) {
    %c0_i32 = arith.constant 0 : i32
    return %arg0, %arg1 : i32, i32
  }
}

</mosaic_0001>

<bundles_post_ra>
// kernel: tpu_custom_call.1
= control target key start
LH: loop header
LB: loop body
LE: loop exit
PB: predicated region body
PF: predicated region fallthrough
CT: control target
= control target key end

     0   :  { %v70_v1 = vmov 0   ;;  %s106_s0 = inlined_call_operand.vmem [shape: f32[2,1], index: 0, kind: input, shape index: {}]   ;;  %s107_s1 = inlined_call_operand.vmem [shape: f32[2,256], index: 1, kind: input, shape index: {}]   ;;  %s108_s2 = inlined_call_operand.hbm [shape: f32[2,256], index: 2, kind: output, shape index: {}]  }
   0x1   :  { %v13_v0 = vld [vmem:[%s106_s0] sm:$0x3]  ;;  %45 = vset.pattern.permute.xlu0 %v70_v1 }
   0x2   :  { %7 = vsyncpa [#allocation3], 0  ;;  %16 = vperm.xlu0 %45, %v13_v0   ;;  %v71_v2 = vmov 269488144   ;;  %v21_v4 = vlaneseq  ;;  %v12_v9 = vld [vmem:[%s107_s1] sm:$0xf] }
   0x3   :  { %v19_v3 = vunpack.c.l.s4 %v71_v2  ;;  %s72_s13 = smov [#allocation2]  }
   0x4   :  { %v22_v6 = vshrl.u32 %v21_v4, 7  ;;  %s34_s14 = sshll.u32 %s72_s13, 4  ;;  %s35_s14 = int_to_ptr.vmem [resolvable:$true] %s34_s14 }
   0x5   :  { %v20_v5 = vunpack.c.0.s8 %v19_v3  ;;  %s46_s0 = scalar_lea.vmem %s35_s14, 64  ;;  %p51_p1 = scmp.lt.s32.totalorder %s35_s14, %s35_s14 }
   0x6   :  { %p47_p0 = scmp.ne.s32.totalorder %s35_s14, %s46_s0  ;;  %p52_p2 = scmp.lt.s32.totalorder %s46_s0, %s46_s0 }
   0x7   :  { %v23_v7 = vsub.s32 %v20_v5, %v22_v6 }
   0x8   :  { %p53_p3 = por %p52_p2, %p51_p1 }
   0xa   :  { %p54_p4 = pnand %p53_p3, %p47_p0 }
  0x81   :  { %v17_v8 = vpop.permute.xlu0 %16 }
  0x82   :  { %v24_v10 = vrot.slane %v17_v8, %v23_v7 }
  0x84   :  { %v26_v11 = vmul.f32 %v24_v10, %v12_v9 }
  0x86   :  { %27 = vst [vmem:[#allocation2] sm:$0xf] %v26_v11 }
  0x87   :  { %57 = shalt.err (!%p54_p4)
}
  0x88   :  { %s58_s17 = scalar_lea.hbm %s108_s2, 64 }
  0x89   :  { %p59_p5 = scmp.ne.s32.totalorder %s108_s2, %s58_s17  ;;  %p62_p6 = scmp.lt.u32.totalorder %s58_s17, %s108_s2 }
  0x8b   :  { %p64_p7 = pnand %p62_p6, %p59_p5 }
  0x8d   :  { %67 = shalt.err (!%p64_p7)
}
  0x8e   :  { %37 = dma.vmem_to_hbm [thread:$0]  %s35_s14, 64, %s108_s2, [#allocation3]  }
  0x8f   :  { %68 = dma.done.wait [#allocation3], 64  }
  0x90   :  { %69 = vsyncadd [#allocation3], 4294967232 }
  0x91   :  { %41 = vsyncpa [#allocation3], 1 }

</bundles_post_ra>
